<compile_context>
chip_gen: v5e
topology: v5e:2x2
jax: 0.10.0
libtpu: 0.0.40
codegen_flags: <defaults>
</compile_context>

<pallas_src>
import functools

import jax
import jax.numpy as jnp
from jax.experimental import pallas as pl
from jax.experimental.pallas import tpu as pltpu


def _round_up(x, m):
    return ((x + m - 1) // m) * m


# ---------------------------------------------------------------------------
# Kernel: GMF product + 3-layer MLP (BN folded) + lane-major output reduce + sigmoid
# ---------------------------------------------------------------------------
def _ncf_kernel(x_ref, w1_ref, b1_ref, w2_ref, b2_ref, w3_ref, b3_ref,
                wog_ref, wom_ref, bo_ref, out_ref, *, d):
    f32 = jnp.float32

    # Packed activation block (TILE_B, 4D): [u_mlp | i_mlp | u_gmf | i_gmf].
    # Static ref slices -> no extra data movement; the MLP half is lane-contiguous.
    mlp_in = x_ref[:, 0:2 * d]                       # (TILE_B, 2D), compute_dtype
    u_gmf = x_ref[:, 2 * d:3 * d].astype(f32)
    i_gmf = x_ref[:, 3 * d:4 * d].astype(f32)

    # GMF branch: elementwise product kept in f32 (v5e VPU has no bf16).
    gmf = u_gmf * i_gmf                              # (TILE_B, D) f32

    # MLP layer 1: single matmul on the packed [u_mlp | i_mlp] half.
    h = jnp.dot(mlp_in, w1_ref[...], preferred_element_type=f32) + b1_ref[...]
    h = jnp.maximum(h, 0.0)

    # Layers 2 & 3 (eval-mode BN folded into weights/biases by the wrapper).
    h = jnp.dot(h.astype(w2_ref.dtype), w2_ref[...],
                preferred_element_type=f32) + b2_ref[...]
    h = jnp.maximum(h, 0.0)
    h = jnp.dot(h.astype(w3_ref.dtype), w3_ref[...],
                preferred_element_type=f32) + b3_ref[...]
    h = jnp.maximum(h, 0.0)

    # Output layer (out_features == 1): trans-B matmuls (contract the last dim of both
    # operands, same pattern as Q.K^T in attention) so logits come out lane-major as a
    # (., TILE_B) row -> unmasked vector stores into the lane-dense output block.
    # The output weights are pre-broadcast to 8 rows in the wrapper (full sublane tile);
    # only row 0 is used.
    dn = (((1,), (1,)), ((), ()))
    r = (jax.lax.dot_general(wog_ref[...], gmf, dn, preferred_element_type=f32)
         + jax.lax.dot_general(wom_ref[...], h, dn, preferred_element_type=f32))
    logits = r[0:1, :] + bo_ref[...]                 # (1, TILE_B) + (1, 1)
    out_ref[...] = jax.nn.sigmoid(logits).astype(out_ref.dtype)


# ---------------------------------------------------------------------------
# Wrapper
# ---------------------------------------------------------------------------
def ncf_forward_pallas(user_idx, item_idx, params, *,
                       compute_dtype=jnp.bfloat16, tile_b=4096):
    """Fused NCF forward. Gathers are XLA glue; everything else is one kernel."""
    f32 = jnp.float32
    D = params["user_gmf"].shape[1]
    B = user_idx.shape[0]

    # ---- Batch tiling: lane-dense 128-multiple tiles (also satisfies bf16's (16,128)
    # packing), large enough that the ~0.35us per-step overhead is amortized, and
    # capped so big batches keep >= 2 grid steps (both v7x TensorCores get work). ----
    B128 = _round_up(B, 128)
    TILE_B = min(_round_up(max(int(tile_b), 1), 128), B128)
    if TILE_B == B128 and B128 >= 256:
        TILE_B = _round_up(B128 // 2, 128)
    B_pad = _round_up(B, TILE_B)
    num_tiles = B_pad // TILE_B

    # ---- Pad the (cheap) int32 index arrays, not the activations. ----
    if B_pad != B:
        user_idx = jnp.pad(user_idx, (0, B_pad - B))
        item_idx = jnp.pad(item_idx, (0, B_pad - B))

    # ---- Gather + cast + pack into one lane-dense (B_pad, 4D) activation stream.
    # Order [u_mlp | i_mlp | u_gmf | i_gmf] keeps the layer-1 operand contiguous.
    # (In production the tables would be stored pre-packed in compute_dtype.) ----
    x = jnp.concatenate([
        params["user_mlp"][user_idx].astype(compute_dtype),
        params["item_mlp"][item_idx].astype(compute_dtype),
        params["user_gmf"][user_idx].astype(compute_dtype),
        params["item_gmf"][item_idx].astype(compute_dtype),
    ], axis=1)

    # ---- Fold eval-mode BatchNorm into the next Linear (exact: ReLU precedes BN). ----
    def bn_fold(bn):
        gamma, beta, mean, var, eps = bn
        scale = gamma / jnp.sqrt(var + eps)
        shift = beta - mean * scale
        return scale, shift

    s1, t1 = bn_fold(params["bn1"])
    s2, t2 = bn_fold(params["bn2"])
    s3, t3 = bn_fold(params["bn3"])

    # Matmul operands in compute_dtype (bf16 halves HBM bytes, f32 accumulate);
    # biases / output weights stay f32 (tiny; keeps the elementwise path f32).
    w1 = params["w1"].astype(compute_dtype)                    # (2D, L1)
    b1 = params["b1"][None, :].astype(f32)
    w2 = (s1[:, None] * params["w2"]).astype(compute_dtype)    # BN1 folded
    b2 = (params["b2"] + t1 @ params["w2"])[None, :].astype(f32)
    w3 = (s2[:, None] * params["w3"]).astype(compute_dtype)    # BN2 folded
    b3 = (params["b3"] + t2 @ params["w3"])[None, :].astype(f32)

    wo = params["wo"]                                          # (D + L3, 1), [gmf, mlp]
    L3 = wo.shape[0] - D
    wog8 = jnp.broadcast_to(wo[:D, 0][None, :], (8, D)).astype(f32)          # (8, D)
    wom8 = jnp.broadcast_to((s3 * wo[D:, 0])[None, :], (8, L3)).astype(f32)  # BN3 folded
    bo = (params["bo"] + jnp.dot(t3, wo[D:, 0]))[None, :].astype(f32)        # (1, 1)

    acts = [x]
    consts = [w1, b1, w2, b2, w3, b3, wog8, wom8, bo]

    # Specs built from the operand lists -> counts can never mismatch.
    act_specs = [pl.BlockSpec((TILE_B, a.shape[1]), lambda b: (b, 0)) for a in acts]
    const_specs = [pl.BlockSpec(c.shape, lambda b: (0, 0)) for c in consts]

    L1, L2 = params["w1"].shape[1], params["w2"].shape[1]
    flops = int(B_pad) * int(2 * (2 * D * L1 + L1 * L2 + L2 * L3 + 8 * (D + L3))
                             + D + L1 + L2 + L3)
    bytes_accessed = int(sum(int(a.size) * a.dtype.itemsize for a in acts)
                         + sum(int(c.size) * c.dtype.itemsize for c in consts)
                         + B_pad * 4)
    cost = pl.CostEstimate(flops=flops, transcendentals=int(B_pad),
                           bytes_accessed=bytes_accessed)

    out = pl.pallas_call(
        functools.partial(_ncf_kernel, d=D),
        out_shape=jax.ShapeDtypeStruct((1, B_pad), jnp.float32),  # lane-dense output
        grid=(num_tiles,),
        in_specs=act_specs + const_specs,
        out_specs=pl.BlockSpec((1, TILE_B), lambda b: (0, b)),
        compiler_params=pltpu.CompilerParams(
            dimension_semantics=("parallel",),
            vmem_limit_bytes=48 * 1024 * 1024,   # stays under v7x's 64 MiB physical VMEM
        ),
        cost_estimate=cost,
    )(*acts, *consts)

    return out[0, :B][:, None]


# ---------------------------------------------------------------------------
# Deterministic parameter init (matches PyTorch shapes / xavier init) + reference
# ---------------------------------------------------------------------------
def xavier_uniform(key, fan_in, fan_out, shape):
    bound = jnp.sqrt(6.0 / (fan_in + fan_out))
    return jax.random.uniform(key, shape, jnp.float32, -bound, bound)


def init_params(key, num_users, num_items, embedding_dim, layers, randomize_bn=True):
    keys = jax.random.split(key, 32)
    p = {}
    p["user_gmf"] = xavier_uniform(keys[0], num_users, embedding_dim, (num_users, embedding_dim))
    p["item_gmf"] = xavier_uniform(keys[1], num_items, embedding_dim, (num_items, embedding_dim))
    p["user_mlp"] = xavier_uniform(keys[2], num_users, embedding_dim, (num_users, embedding_dim))
    p["item_mlp"] = xavier_uniform(keys[3], num_items, embedding_dim, (num_items, embedding_dim))

    in_size = 2 * embedding_dim
    for i, out_size in enumerate(layers):
        # PyTorch Linear weight is (out, in); stored transposed as (in, out).
        p[f"w{i + 1}"] = xavier_uniform(keys[4 + i], in_size, out_size, (in_size, out_size))
        p[f"b{i + 1}"] = jnp.zeros((out_size,), jnp.float32)
        if randomize_bn:
            kg, kb, km, kv = jax.random.split(keys[10 + i], 4)
            gamma = jax.random.uniform(kg, (out_size,), jnp.float32, 0.8, 1.2)
            beta = jax.random.uniform(kb, (out_size,), jnp.float32, -0.1, 0.1)
            mean = jax.random.uniform(km, (out_size,), jnp.float32, -0.1, 0.1)
            var = jax.random.uniform(kv, (out_size,), jnp.float32, 0.5, 1.5)
        else:
            gamma = jnp.ones((out_size,), jnp.float32)
            beta = jnp.zeros((out_size,), jnp.float32)
            mean = jnp.zeros((out_size,), jnp.float32)
            var = jnp.ones((out_size,), jnp.float32)
        p[f"bn{i + 1}"] = (gamma, beta, mean, var, 1e-5)
        in_size = out_size

    out_in = layers[-1] + embedding_dim
    p["wo"] = xavier_uniform(keys[20], out_in, 1, (out_in, 1))
    p["bo"] = jnp.zeros((1,), jnp.float32)
    return p


def ncf_reference(user_idx, item_idx, params, layers, compute_dtype=jnp.float32):
    """Plain-JAX eval-mode reference mirroring the kernel's precision handling."""
    f32 = jnp.float32
    cd = compute_dtype
    u_gmf = params["user_gmf"][user_idx].astype(cd).astype(f32)
    i_gmf = params["item_gmf"][item_idx].astype(cd).astype(f32)
    gmf = u_gmf * i_gmf
    h = jnp.concatenate([params["user_mlp"][user_idx].astype(cd).astype(f32),
                         params["item_mlp"][item_idx].astype(cd).astype(f32)], axis=1)
    for i in range(len(layers)):
        w = params[f"w{i + 1}"].astype(cd).astype(f32)
        h = h.astype(cd).astype(f32) @ w + params[f"b{i + 1}"]
        h = jnp.maximum(h, 0.0)
        gamma, beta, mean, var, eps = params[f"bn{i + 1}"]
        h = gamma * (h - mean) / jnp.sqrt(var + eps) + beta
        # Dropout: identity in eval mode.
    pred_vec = jnp.concatenate([gmf, h], axis=1)
    logits = pred_vec @ params["wo"] + params["bo"]
    return jax.nn.sigmoid(logits)


if __name__ == "__main__":
    num_users, num_items = 50, 80
    embedding_dim = 32
    layers = [64, 64, 32]

    key = jax.random.PRNGKey(0)
    k_params, k_u, k_i = jax.random.split(key, 3)
    params = init_params(k_params, num_users, num_items, embedding_dim, layers)

    fwd = jax.jit(ncf_forward_pallas, static_argnames=("compute_dtype", "tile_b"))

    # --- Test 1: f32, small batch (20 -> padded to one 128-row tile) ---
    b1 = 20
    u1 = jax.random.randint(k_u, (b1,), 0, num_users)
    i1 = jax.random.randint(k_i, (b1,), 0, num_items)
    pred = jax.block_until_ready(fwd(u1, i1, params, compute_dtype=jnp.float32))
    ref = ncf_reference(u1, i1, params, layers, compute_dtype=jnp.float32)
    assert pred.shape == (b1, 1)
    # BN folding + MXU accumulation order differ from the separate-BN reference at
    # the ~1e-6 level; 1e-4 on probabilities keeps the check meaningful but robust.
    assert jnp.allclose(pred, ref, atol=1e-4, rtol=1e-4), (pred, ref)

    # --- Test 2: f32, multi-step grid (batch 300, TILE_B=128 -> 3 grid steps) ---
    b2 = 300
    u2 = jax.random.randint(jax.random.PRNGKey(1), (b2,), 0, num_users)
    i2 = jax.random.randint(jax.random.PRNGKey(2), (b2,), 0, num_items)
    pred = jax.block_until_ready(
        fwd(u2, i2, params, compute_dtype=jnp.float32, tile_b=128))
    ref = ncf_reference(u2, i2, params, layers, compute_dtype=jnp.float32)
    assert pred.shape == (b2, 1)
    assert jnp.allclose(pred, ref, atol=1e-4, rtol=1e-4), (pred, ref)

    # --- Test 3: bf16 storage path, default tiling (>=2 steps via TILE_B cap) ---
    pred = jax.block_until_ready(fwd(u2, i2, params, compute_dtype=jnp.bfloat16))
    ref = ncf_reference(u2, i2, params, layers, compute_dtype=jnp.bfloat16)
    assert pred.shape == (b2, 1)
    assert jnp.allclose(pred, ref, atol=2e-2, rtol=2e-2), (pred, ref)

    print("KERNEL_OK")
</pallas_src>

<mosaic_0001>
module attributes {stable_mosaic.version = 11 : i64} {
  func.func @_ncf_kernel(%arg0: i32, %arg1: memref<128x128xf32, #tpu.memory_space<vmem>>, %arg2: memref<64x64xf32, #tpu.memory_space<vmem>>, %arg3: memref<1x64xf32, #tpu.memory_space<vmem>>, %arg4: memref<64x64xf32, #tpu.memory_space<vmem>>, %arg5: memref<1x64xf32, #tpu.memory_space<vmem>>, %arg6: memref<64x32xf32, #tpu.memory_space<vmem>>, %arg7: memref<1x32xf32, #tpu.memory_space<vmem>>, %arg8: memref<8x32xf32, #tpu.memory_space<vmem>>, %arg9: memref<8x32xf32, #tpu.memory_space<vmem>>, %arg10: memref<1x1xf32, #tpu.memory_space<vmem>>, %arg11: memref<1x128xf32, #tpu.memory_space<vmem>>) attributes {dimension_semantics = [#tpu.dimension_semantics<parallel>], iteration_bounds = array<i64: 1>, scalar_prefetch = 0 : i64, scratch_operands = 0 : i64, tpu.core_type = #tpu.core_type<tc>, window_params = [{transform_indices = @transform_0, window_bounds = array<i64: 128, 128>}, {pipeline_mode = #tpu.pipeline_mode<synchronous>, transform_indices = @transform_1, window_bounds = array<i64: 64, 64>}, {pipeline_mode = #tpu.pipeline_mode<synchronous>, transform_indices = @transform_2, window_bounds = array<i64: 1, 64>}, {pipeline_mode = #tpu.pipeline_mode<synchronous>, transform_indices = @transform_3, window_bounds = array<i64: 64, 64>}, {pipeline_mode = #tpu.pipeline_mode<synchronous>, transform_indices = @transform_4, window_bounds = array<i64: 1, 64>}, {pipeline_mode = #tpu.pipeline_mode<synchronous>, transform_indices = @transform_5, window_bounds = array<i64: 64, 32>}, {pipeline_mode = #tpu.pipeline_mode<synchronous>, transform_indices = @transform_6, window_bounds = array<i64: 1, 32>}, {pipeline_mode = #tpu.pipeline_mode<synchronous>, transform_indices = @transform_7, window_bounds = array<i64: 8, 32>}, {pipeline_mode = #tpu.pipeline_mode<synchronous>, transform_indices = @transform_8, window_bounds = array<i64: 8, 32>}, {pipeline_mode = #tpu.pipeline_mode<synchronous>, transform_indices = @transform_9, window_bounds = array<i64: 1, 1>}, {transform_indices = @transform_10, window_bounds = array<i64: 1, 128>}]} {
    %c0 = arith.constant 0 : index
    %c0_0 = arith.constant 0 : index
    %0 = vector.load %arg1[%c0, %c0_0] : memref<128x128xf32, #tpu.memory_space<vmem>>, vector<128x64xf32>
    %c0_1 = arith.constant 0 : index
    %c64 = arith.constant 64 : index
    %1 = vector.load %arg1[%c0_1, %c64] : memref<128x128xf32, #tpu.memory_space<vmem>>, vector<128x32xf32>
    %c0_2 = arith.constant 0 : index
    %c96 = arith.constant 96 : index
    %2 = vector.load %arg1[%c0_2, %c96] : memref<128x128xf32, #tpu.memory_space<vmem>>, vector<128x32xf32>
    %3 = arith.mulf %1, %2 : vector<128x32xf32>
    %c0_3 = arith.constant 0 : index
    %c0_4 = arith.constant 0 : index
    %4 = vector.load %arg2[%c0_3, %c0_4] : memref<64x64xf32, #tpu.memory_space<vmem>>, vector<64x64xf32>
    %cst = arith.constant dense<0.000000e+00> : vector<128x64xf32>
    %5 = tpu.matmul %0, %4, %cst {dimension_numbers = #tpu.dot_dimension_numbers<[1], [0], [0], [1], [0, 0, 1, 1], [], []>} : vector<128x64xf32>, vector<64x64xf32>, vector<128x64xf32> -> vector<128x64xf32>
    %c0_5 = arith.constant 0 : index
    %c0_6 = arith.constant 0 : index
    %6 = vector.load %arg3[%c0_5, %c0_6] : memref<1x64xf32, #tpu.memory_space<vmem>>, vector<1x64xf32>
    %7 = vector.broadcast %6 : vector<1x64xf32> to vector<128x64xf32>
    %8 = arith.addf %5, %7 : vector<128x64xf32>
    %cst_7 = arith.constant 0.000000e+00 : f32
    %9 = vector.broadcast %cst_7 : f32 to vector<128x64xf32>
    %10 = arith.maximumf %8, %9 : vector<128x64xf32>
    %c0_8 = arith.constant 0 : index
    %c0_9 = arith.constant 0 : index
    %11 = vector.load %arg4[%c0_8, %c0_9] : memref<64x64xf32, #tpu.memory_space<vmem>>, vector<64x64xf32>
    %cst_10 = arith.constant dense<0.000000e+00> : vector<128x64xf32>
    %12 = tpu.matmul %10, %11, %cst_10 {dimension_numbers = #tpu.dot_dimension_numbers<[1], [0], [0], [1], [0, 0, 1, 1], [], []>} : vector<128x64xf32>, vector<64x64xf32>, vector<128x64xf32> -> vector<128x64xf32>
    %c0_11 = arith.constant 0 : index
    %c0_12 = arith.constant 0 : index
    %13 = vector.load %arg5[%c0_11, %c0_12] : memref<1x64xf32, #tpu.memory_space<vmem>>, vector<1x64xf32>
    %14 = vector.broadcast %13 : vector<1x64xf32> to vector<128x64xf32>
    %15 = arith.addf %12, %14 : vector<128x64xf32>
    %cst_13 = arith.constant 0.000000e+00 : f32
    %16 = vector.broadcast %cst_13 : f32 to vector<128x64xf32>
    %17 = arith.maximumf %15, %16 : vector<128x64xf32>
    %c0_14 = arith.constant 0 : index
    %c0_15 = arith.constant 0 : index
    %18 = vector.load %arg6[%c0_14, %c0_15] : memref<64x32xf32, #tpu.memory_space<vmem>>, vector<64x32xf32>
    %cst_16 = arith.constant dense<0.000000e+00> : vector<128x32xf32>
    %19 = tpu.matmul %17, %18, %cst_16 {dimension_numbers = #tpu.dot_dimension_numbers<[1], [0], [0], [1], [0, 0, 1, 1], [], []>} : vector<128x64xf32>, vector<64x32xf32>, vector<128x32xf32> -> vector<128x32xf32>
    %c0_17 = arith.constant 0 : index
    %c0_18 = arith.constant 0 : index
    %20 = vector.load %arg7[%c0_17, %c0_18] : memref<1x32xf32, #tpu.memory_space<vmem>>, vector<1x32xf32>
    %21 = vector.broadcast %20 : vector<1x32xf32> to vector<128x32xf32>
    %22 = arith.addf %19, %21 : vector<128x32xf32>
    %cst_19 = arith.constant 0.000000e+00 : f32
    %23 = vector.broadcast %cst_19 : f32 to vector<128x32xf32>
    %24 = arith.maximumf %22, %23 : vector<128x32xf32>
    %c0_20 = arith.constant 0 : index
    %c0_21 = arith.constant 0 : index
    %25 = vector.load %arg8[%c0_20, %c0_21] : memref<8x32xf32, #tpu.memory_space<vmem>>, vector<8x32xf32>
    %cst_22 = arith.constant dense<0.000000e+00> : vector<8x128xf32>
    %26 = tpu.matmul %25, %3, %cst_22 {dimension_numbers = #tpu.dot_dimension_numbers<[1], [1], [0], [0], [0, 0, 1, 0], [], []>} : vector<8x32xf32>, vector<128x32xf32>, vector<8x128xf32> -> vector<8x128xf32>
    %c0_23 = arith.constant 0 : index
    %c0_24 = arith.constant 0 : index
    %27 = vector.load %arg9[%c0_23, %c0_24] : memref<8x32xf32, #tpu.memory_space<vmem>>, vector<8x32xf32>
    %cst_25 = arith.constant dense<0.000000e+00> : vector<8x128xf32>
    %28 = tpu.matmul %27, %24, %cst_25 {dimension_numbers = #tpu.dot_dimension_numbers<[1], [1], [0], [0], [0, 0, 1, 0], [], []>} : vector<8x32xf32>, vector<128x32xf32>, vector<8x128xf32> -> vector<8x128xf32>
    %29 = arith.addf %26, %28 : vector<8x128xf32>
    %30 = vector.extract_strided_slice %29 {offsets = [0, 0], sizes = [1, 128], strides = [1, 1]} : vector<8x128xf32> to vector<1x128xf32>
    %c0_26 = arith.constant 0 : index
    %c0_27 = arith.constant 0 : index
    %31 = vector.load %arg10[%c0_26, %c0_27] : memref<1x1xf32, #tpu.memory_space<vmem>>, vector<1x1xf32>
    %32 = vector.broadcast %31 : vector<1x1xf32> to vector<1x128xf32>
    %33 = arith.addf %30, %32 : vector<1x128xf32>
    %34 = arith.negf %33 : vector<1x128xf32>
    %35 = math.exp %34 : vector<1x128xf32>
    %cst_28 = arith.constant 1.000000e+00 : f32
    %36 = vector.broadcast %cst_28 : f32 to vector<1x128xf32>
    %37 = arith.addf %36, %35 : vector<1x128xf32>
    %38 = arith.divf %36, %37 : vector<1x128xf32>
    %c0_29 = arith.constant 0 : index
    %c0_30 = arith.constant 0 : index
    %39 = vector.load %arg11[%c0_29, %c0_30] : memref<1x128xf32, #tpu.memory_space<vmem>>, vector<1x128xf32>
    tpu.vector_store %arg11[%c0_29, %c0_30], %38 {strides = array<i32>} : memref<1x128xf32, #tpu.memory_space<vmem>>, vector<1x128xf32>,
    return
  }
  func.func @transform_0(%arg0: i32) -> (i32, i32) {
    %c0_i32 = arith.constant 0 : i32
    %c0_i32_0 = arith.constant 0 : i32
    return %arg0, %c0_i32 : i32, i32
  }
  func.func @transform_1(%arg0: i32) -> (i32, i32) {
    %c0_i32 = arith.constant 0 : i32
    %c0_i32_0 = arith.constant 0 : i32
    %c0_i32_1 = arith.constant 0 : i32
    return %c0_i32, %c0_i32_0 : i32, i32
  }
  func.func @transform_2(%arg0: i32) -> (i32, i32) {
    %c0_i32 = arith.constant 0 : i32
    %c0_i32_0 = arith.constant 0 : i32
    %c0_i32_1 = arith.constant 0 : i32
    return %c0_i32, %c0_i32_0 : i32, i32
  }
  func.func @transform_3(%arg0: i32) -> (i32, i32) {
    %c0_i32 = arith.constant 0 : i32
    %c0_i32_0 = arith.constant 0 : i32
    %c0_i32_1 = arith.constant 0 : i32
    return %c0_i32, %c0_i32_0 : i32, i32
  }
  func.func @transform_4(%arg0: i32) -> (i32, i32) {
    %c0_i32 = arith.constant 0 : i32
    %c0_i32_0 = arith.constant 0 : i32
    %c0_i32_1 = arith.constant 0 : i32
    return %c0_i32, %c0_i32_0 : i32, i32
  }
  func.func @transform_5(%arg0: i32) -> (i32, i32) {
    %c0_i32 = arith.constant 0 : i32
    %c0_i32_0 = arith.constant 0 : i32
    %c0_i32_1 = arith.constant 0 : i32
    return %c0_i32, %c0_i32_0 : i32, i32
  }
  func.func @transform_6(%arg0: i32) -> (i32, i32) {
    %c0_i32 = arith.constant 0 : i32
    %c0_i32_0 = arith.constant 0 : i32
    %c0_i32_1 = arith.constant 0 : i32
    return %c0_i32, %c0_i32_0 : i32, i32
  }
  func.func @transform_7(%arg0: i32) -> (i32, i32) {
    %c0_i32 = arith.constant 0 : i32
    %c0_i32_0 = arith.constant 0 : i32
    %c0_i32_1 = arith.constant 0 : i32
    return %c0_i32, %c0_i32_0 : i32, i32
  }
  func.func @transform_8(%arg0: i32) -> (i32, i32) {
    %c0_i32 = arith.constant 0 : i32
    %c0_i32_0 = arith.constant 0 : i32
    %c0_i32_1 = arith.constant 0 : i32
    return %c0_i32, %c0_i32_0 : i32, i32
  }
  func.func @transform_9(%arg0: i32) -> (i32, i32) {
    %c0_i32 = arith.constant 0 : i32
    %c0_i32_0 = arith.constant 0 : i32
    %c0_i32_1 = arith.constant 0 : i32
    return %c0_i32, %c0_i32_0 : i32, i32
  }
  func.func @transform_10(%arg0: i32) -> (i32, i32) {
    %c0_i32 = arith.constant 0 : i32
    %c0_i32_0 = arith.constant 0 : i32
    return %c0_i32, %arg0 : i32, i32
  }
}

</mosaic_0001>

<bundles_post_ra>
// kernel: ncf_forward_pallas.1
= control target key start
LH: loop header
LB: loop body
LE: loop exit
PB: predicated region body
PF: predicated region fallthrough
CT: control target
= control target key end

     0   :  { %vm145_vm0 = vcmask 523264   ;;  %vm543_vm1 = vcmask 261120   ;;  %s1307_s1 = inlined_call_operand.vmem [shape: f32[64,64], index: 1, kind: input, shape index: {}]   ;;  %s1308_s2 = inlined_call_operand.vmem [shape: f32[1,64], index: 2, kind: input, shape index: {}]   ;;  %s1309_s0 = inlined_call_operand.vmem [shape: f32[128,128], index: 0, kind: input, shape index: {}]   ;;  %s1310_s3 = inlined_call_operand.vmem [shape: f32[64,64], index: 3, kind: input, shape index: {}]   ;;  %s1311_s4 = inlined_call_operand.vmem [shape: f32[1,64], index: 4, kind: input, shape index: {}]   ;;  %s1312_s5 = inlined_call_operand.vmem [shape: f32[64,32], index: 5, kind: input, shape index: {}]   ;;  %s1313_s6 = inlined_call_operand.vmem [shape: f32[1,32], index: 6, kind: input, shape index: {}]   ;;  %s1314_s8 = inlined_call_operand.vmem [shape: f32[8,32], index: 8, kind: input, shape index: {}]   ;;  %s1315_s9 = inlined_call_operand.<no memory space> [shape: f32[1,1], index: 9, kind: input, shape index: {}]   ;;  %s1316_s7 = inlined_call_operand.vmem [shape: f32[8,32], index: 7, kind: input, shape index: {}]   ;;  %s1317_s10 = inlined_call_operand.vmem [shape: f32[1,128], index: 10, kind: output, shape index: {}]  }
   0x1   :  { %v140_v0 = vld [vmem:[%s1307_s1 + $0x38] sm:$0xff]  ;;  %v139_v1 = vld [vmem:[%s1307_s1 + $0x30] sm:$0xff]  ;;  %v138_v2 = vld [vmem:[%s1307_s1 + $0x28] sm:$0xff] }
   0x2   :  { %186 = vmatpush.msra.mxu0 %v140_v0  ;;  %v137_v3 = vld [vmem:[%s1307_s1 + $0x20] sm:$0xff]  ;;  %v136_v4 = vld [vmem:[%s1307_s1 + $0x18] sm:$0xff]  ;;  %v135_v5 = vld [vmem:[%s1307_s1 + $0x10] sm:$0xff] }
   0x3   :  { %v134_v6 = vld [vmem:[%s1307_s1 + $0x8] sm:$0xff]  ;;  %v133_v7 = vld [vmem:[%s1307_s1] sm:$0xff]  ;;  %v944_v10 = vld [vmem:[%s1309_s0 + $0x10] sm:$0xff] }
   0x4   :  { %187 = vmatpush.msra.mxu0 %v139_v1  ;;  %v930_v8 = vld [vmem:[%s1309_s0] sm:$0xff]  ;;  %v937_v9 = vld [vmem:[%s1309_s0 + $0x8] sm:$0xff]  ;;  %v951_v11 = vld [vmem:[%s1309_s0 + $0x18] sm:$0xff] }
   0x5   :  { %v958_v12 = vld [vmem:[%s1309_s0 + $0x20] sm:$0xff]  ;;  %v965_v13 = vld [vmem:[%s1309_s0 + $0x28] sm:$0xff]  ;;  %v972_v14 = vld [vmem:[%s1309_s0 + $0x30] sm:$0xff] }
   0x6   :  { %188 = vmatpush.msra.mxu0 %v138_v2  ;;  %v979_v15 = vld [vmem:[%s1309_s0 + $0x38] sm:$0xff]  ;;  %v986_v16 = vld [vmem:[%s1309_s0 + $0x40] sm:$0xff]  ;;  %v993_v17 = vld [vmem:[%s1309_s0 + $0x48] sm:$0xff] }
   0x7   :  { %v1000_v18 = vld [vmem:[%s1309_s0 + $0x50] sm:$0xff]  ;;  %v266_v19 = vld [vmem:[%s1310_s3 + $0x38] sm:$0xff]  ;;  %v264_v21 = vld [vmem:[%s1310_s3 + $0x28] sm:$0xff] }
   0x8   :  { %189 = vmatpush.msra.mxu0 %v137_v3  ;;  %v265_v20 = vld [vmem:[%s1310_s3 + $0x30] sm:$0xff]  ;;  %327 = vmatpush.msra.mxu1 %v266_v19  ;;  %v1016_v22 = vld [vmem:[%s1309_s0 + $0x58] sm:$0xff]  ;;  %v263_v23 = vld [vmem:[%s1310_s3 + $0x20] sm:$0xff] }
   0x9   :  { %v262_v24 = vld [vmem:[%s1310_s3 + $0x18] sm:$0xff]  ;;  %v261_v25 = vld [vmem:[%s1310_s3 + $0x10] sm:$0xff]  ;;  %v1032_v26 = vld [vmem:[%s1309_s0 + $0x60] sm:$0xff] }
   0xa   :  { %190 = vmatpush.msra.mxu0 %v136_v4  ;;  %328 = vmatpush.msra.mxu1 %v265_v20  ;;  %v260_v27 = vld [vmem:[%s1310_s3 + $0x8] sm:$0xff]  ;;  %v259_v28 = vld [vmem:[%s1310_s3] sm:$0xff]  ;;  %v1052_v30 = vld [vmem:[%s1309_s0 + $0x70] sm:$0xff] }
   0xb   :  { %v1045_v29 = vld [vmem:[%s1309_s0 + $0x68] sm:$0xff]  ;;  %v1059_v31 = vld [vmem:[%s1309_s0 + $0x78] sm:$0xff]  ;;  %v1066_v32 = vld [vmem:[%s1308_s2] ss:$0 sm:$0xff]  ;;  %s845_s0 = smov 96  }
   0xc   :  { %191 = vmatpush.msra.mxu0 %v135_v5  ;;  %329 = vmatpush.msra.mxu1 %v264_v21  ;;  %v407_v2 = vld [vmem:[%s1312_s5 + $0x38] sm:$0xff]  ;;  %v406_v5 = vld [vmem:[%s1312_s5 + $0x30] sm:$0xff]  ;;  %v404_v19 = vld [vmem:[%s1312_s5 + $0x20] sm:$0xff] }
   0xd   :  { %95 = vrot.lane.b32.xlu1 %v1045_v29, %s845_s0  ;;  %99 = vrot.lane.b32.xlu0 %v1059_v31, %s845_s0  ;;  %v403_v20 = vld [vmem:[%s1312_s5 + $0x18] sm:$0xff] }
   0xe   :  { %192 = vmatpush.msra.mxu0 %v134_v6  ;;  %330 = vmatpush.msra.mxu1 %v263_v23 }
   0xf   :  { %91 = vrot.lane.b32.xlu2 %v1016_v22, %s845_s0  ;;  %468 = vmatpush.msra.mxu2 %v407_v2 }
  0x10   :  { %193 = vmatpush.msra.mxu0 %v133_v7  ;;  %331 = vmatpush.msra.mxu1 %v262_v24  ;;  %v405_v7 = vld [vmem:[%s1312_s5 + $0x28] sm:$0xff]  ;;  %v402_v24 = vld [vmem:[%s1312_s5 + $0x10] sm:$0xff] }
  0x11   :  { %750 = vmatmul.msk.f32.vlgmr.msra.gmra.mxu0 %vm145_vm0, %v930_v8  ;;  %469 = vmatpush.msra.mxu2 %v406_v5 }
  0x12   :  { %332 = vmatpush.msra.mxu1 %v261_v25 }
  0x13   :  { %470 = vmatpush.msra.mxu2 %v405_v7 }
  0x14   :  { %333 = vmatpush.msra.mxu1 %v260_v27  ;;  %v401_v27 = vld [vmem:[%s1312_s5 + $0x8] sm:$0xff] }
  0x15   :  { %97 = vrot.lane.b32.xlu0 %v1052_v30, %s845_s0  ;;  %93 = vrot.lane.b32.xlu1 %v1032_v26, %s845_s0 }
  0x16   :  { %334 = vmatpush.msra.mxu1 %v259_v28  ;;  %471 = vmatpush.msra.mxu2 %v404_v19  ;;  %v400_v28 = vld [vmem:[%s1312_s5] sm:$0xff] }
  0x17   :  { %89 = vrot.lane.b32.xlu2 %v1000_v18, %s845_s0 }
  0x18   :  { %472 = vmatpush.msra.mxu2 %v403_v20 }
  0x19   :  { %751 = vmatmul.msk.f32.gmra.mxu0 %vm145_vm0, %v937_v9 }
  0x1a   :  { %473 = vmatpush.msra.mxu2 %v402_v24 }
  0x1c   :  { %474 = vmatpush.msra.mxu2 %v401_v27 }
  0x1d   :  { %87 = vrot.lane.b32.xlu0 %v993_v17, %s845_s0  ;;  %85 = vrot.lane.b32.xlu1 %v986_v16, %s845_s0 }
  0x1e   :  { %475 = vmatpush.msra.mxu2 %v400_v28 }
  0x1f   :  { %83 = vrot.lane.b32.xlu2 %v979_v15, %s845_s0 }
  0x21   :  { %752 = vmatmul.msk.f32.gmra.mxu0 %vm145_vm0, %v944_v10 }
  0x25   :  { %81 = vrot.lane.b32.xlu0 %v972_v14, %s845_s0  ;;  %79 = vrot.lane.b32.xlu1 %v965_v13, %s845_s0 }
  0x29   :  { %753 = vmatmul.msk.f32.gmra.mxu0 %vm145_vm0, %v951_v11 }
  0x2d   :  { %77 = vrot.lane.b32.xlu0 %v958_v12, %s845_s0 }
  0x31   :  { %754 = vmatmul.msk.f32.gmra.mxu0 %vm145_vm0, %v958_v12 }
  0x39   :  { %755 = vmatmul.msk.f32.gmra.mxu0 %vm145_vm0, %v965_v13 }
  0x41   :  { %756 = vmatmul.msk.f32.gmra.mxu0 %vm145_vm0, %v972_v14 }
  0x49   :  { %757 = vmatmul.msk.f32.gmra.mxu0 %vm145_vm0, %v979_v15 }
  0x51   :  { %758 = vmatmul.msk.f32.gmra.mxu0 %vm145_vm0, %v986_v16 }
  0x59   :  { %759 = vmatmul.msk.f32.gmra.mxu0 %vm145_vm0, %v993_v17 }
  0x61   :  { %760 = vmatmul.msk.f32.gmra.mxu0 %vm145_vm0, %v1000_v18 }
  0x69   :  { %761 = vmatmul.msk.f32.gmra.mxu0 %vm145_vm0, %v1016_v22 }
  0x71   :  { %762 = vmatmul.msk.f32.gmra.mxu0 %vm145_vm0, %v1032_v26 }
  0x79   :  { %763 = vmatmul.msk.f32.gmra.mxu0 %vm145_vm0, %v1045_v29 }
  0x7f   :  { %v96_v27 = vpop.permute.xlu1 %95 }
  0x80   :  { %v130_v28 = vmul.f32 %v96_v27, %v1045_v29 }
  0x81   :  { %764 = vmatmul.msk.f32.gmra.mxu0 %vm145_vm0, %v1052_v30 }
  0x89   :  { %765 = vmatmul.msk.f32.gmra.mxu0 %vm145_vm0, %v1059_v31 }
  0x8e   :  { %v195_v33 = vpop.f32.mrf.mxu0 }
  0x8f   :  { %v196_v34 = vadd.f32 %v1066_v32, %v195_v33 }
  0x91   :  { %v243_v35 = vmax.f32 %v196_v34, 0.0 }
  0x93   :  { %766 = vmatmul.msk.f32.vlgmr.msra.gmra.mxu1 %vm145_vm0, %v243_v35 }
  0x96   :  { %v198_v36 = vpop.f32.mrf.mxu0 }
  0x97   :  { %v199_v37 = vadd.f32 %v1066_v32, %v198_v36 }
  0x99   :  { %v244_v38 = vmax.f32 %v199_v37, 0.0 }
  0x9b   :  { %767 = vmatmul.msk.f32.gmra.mxu1 %vm145_vm0, %v244_v38 }
  0x9e   :  { %v201_v39 = vpop.f32.mrf.mxu0 }
  0x9f   :  { %v202_v40 = vadd.f32 %v1066_v32, %v201_v39 }
  0xa1   :  { %v245_v41 = vmax.f32 %v202_v40, 0.0 }
  0xa3   :  { %768 = vmatmul.msk.f32.gmra.mxu1 %vm145_vm0, %v245_v41 }
  0xa6   :  { %v204_v42 = vpop.f32.mrf.mxu0 }
  0xa7   :  { %v205_v43 = vadd.f32 %v1066_v32, %v204_v42  ;;  %v1151_v42 = vld [vmem:[%s1311_s4] ss:$0 sm:$0xff]  ;;  %s846_s4 = smov 64  }
  0xa8   :  { %657 = vrot.lane.b32.xlu0 %v130_v28, %s846_s4 }
  0xa9   :  { %v246_v44 = vmax.f32 %v205_v43, 0.0 }
  0xab   :  { %769 = vmatmul.msk.f32.gmra.mxu1 %vm145_vm0, %v246_v44 }
  0xae   :  { %v207_v45 = vpop.f32.mrf.mxu0 }
  0xaf   :  { %v208_v46 = vadd.f32 %v1066_v32, %v207_v45 }
  0xb0   :  { %71 = vrot.lane.b32.xlu0 %v937_v9, %s845_s0 }
  0xb1   :  { %v247_v47 = vmax.f32 %v208_v46, 0.0 }
  0xb3   :  { %770 = vmatmul.msk.f32.gmra.mxu1 %vm145_vm0, %v247_v47 }
  0xb6   :  { %v210_v48 = vpop.f32.mrf.mxu0 }
  0xb7   :  { %v211_v49 = vadd.f32 %v1066_v32, %v210_v48 }
  0xb9   :  { %v248_v50 = vmax.f32 %v211_v49, 0.0 }
  0xbb   :  { %771 = vmatmul.msk.f32.gmra.mxu1 %vm145_vm0, %v248_v50 }
  0xbe   :  { %v213_v51 = vpop.f32.mrf.mxu0 }
  0xbf   :  { %v214_v52 = vadd.f32 %v1066_v32, %v213_v51 }
  0xc1   :  { %v249_v53 = vmax.f32 %v214_v52, 0.0 }
  0xc3   :  { %772 = vmatmul.msk.f32.gmra.mxu1 %vm145_vm0, %v249_v53 }
  0xc6   :  { %v216_v54 = vpop.f32.mrf.mxu0 }
  0xc7   :  { %v217_v55 = vadd.f32 %v1066_v32, %v216_v54 }
  0xc9   :  { %v250_v56 = vmax.f32 %v217_v55, 0.0 }
  0xcb   :  { %773 = vmatmul.msk.f32.gmra.mxu1 %vm145_vm0, %v250_v56 }
  0xce   :  { %v219_v57 = vpop.f32.mrf.mxu0 }
  0xcf   :  { %v220_v58 = vadd.f32 %v1066_v32, %v219_v57 }
  0xd1   :  { %v251_v59 = vmax.f32 %v220_v58, 0.0 }
  0xd3   :  { %774 = vmatmul.msk.f32.gmra.mxu1 %vm145_vm0, %v251_v59 }
  0xd6   :  { %v222_v60 = vpop.f32.mrf.mxu0 }
  0xd7   :  { %v223_v61 = vadd.f32 %v1066_v32, %v222_v60 }
  0xd9   :  { %v252_v62 = vmax.f32 %v223_v61, 0.0 }
  0xdb   :  { %775 = vmatmul.msk.f32.gmra.mxu1 %vm145_vm0, %v252_v62 }
  0xde   :  { %v225_v63 = vpop.f32.mrf.mxu0 }
  0xdf   :  { %v226_v0 = vadd.f32 %v1066_v32, %v225_v63 }
  0xe1   :  { %v253_v1 = vmax.f32 %v226_v0, 0.0 }
  0xe3   :  { %776 = vmatmul.msk.f32.gmra.mxu1 %vm145_vm0, %v253_v1 }
  0xe6   :  { %v228_v3 = vpop.f32.mrf.mxu0 }
  0xe7   :  { %v229_v4 = vadd.f32 %v1066_v32, %v228_v3 }
  0xe9   :  { %v254_v6 = vmax.f32 %v229_v4, 0.0 }
  0xeb   :  { %777 = vmatmul.msk.f32.gmra.mxu1 %vm145_vm0, %v254_v6 }
  0xee   :  { %v231_v21 = vpop.f32.mrf.mxu0 }
  0xef   :  { %v232_v23 = vadd.f32 %v1066_v32, %v231_v21 }
  0xf1   :  { %v255_v25 = vmax.f32 %v232_v23, 0.0 }
  0xf3   :  { %778 = vmatmul.msk.f32.gmra.mxu1 %vm145_vm0, %v255_v25 }
  0xf6   :  { %v234_v33 = vpop.f32.mrf.mxu0 }
  0xf7   :  { %v235_v34 = vadd.f32 %v1066_v32, %v234_v33 }
  0xf9   :  { %v256_v35 = vmax.f32 %v235_v34, 0.0 }
  0xfb   :  { %779 = vmatmul.msk.f32.gmra.mxu1 %vm145_vm0, %v256_v35 }
  0xfe   :  { %v237_v36 = vpop.f32.mrf.mxu0 }
  0xff   :  { %v238_v37 = vadd.f32 %v1066_v32, %v237_v36 }
 0x101   :  { %v257_v38 = vmax.f32 %v238_v37, 0.0 }
 0x103   :  { %780 = vmatmul.msk.f32.gmra.mxu1 %vm145_vm0, %v257_v38 }
 0x106   :  { %v240_v39 = vpop.f32.mrf.mxu0 }
 0x107   :  { %v241_v40 = vadd.f32 %v1066_v32, %v240_v39 }
 0x109   :  { %v258_v41 = vmax.f32 %v241_v40, 0.0 }
 0x10b   :  { %781 = vmatmul.msk.f32.gmra.mxu1 %vm145_vm0, %v258_v41  ;;  %v100_v41 = vpop.permute.xlu0 %99 }
 0x110   :  { %v336_v43 = vpop.f32.mrf.mxu1 }
 0x111   :  { %v337_v44 = vadd.f32 %v1151_v42, %v336_v43  ;;  %v132_v43 = vmul.f32 %v100_v41, %v1059_v31 }
 0x113   :  { %v384_v45 = vmax.f32 %v337_v44, 0.0  ;;  %661 = vrot.lane.b32.xlu2 %v132_v43, %s846_s4 }
 0x115   :  { %782 = vmatmul.msk.f32.vlgmr.msra.gmra.mxu2 %vm145_vm0, %v384_v45 }
 0x118   :  { %v339_v46 = vpop.f32.mrf.mxu1 }
 0x119   :  { %v340_v47 = vadd.f32 %v1151_v42, %v339_v46 }
 0x11b   :  { %v385_v48 = vmax.f32 %v340_v47, 0.0  ;;  %v98_v47 = vpop.permute.xlu0 %97  ;;  %75 = vrot.lane.b32.xlu2 %v951_v11, %s845_s0 }
 0x11d   :  { %783 = vmatmul.msk.f32.gmra.mxu2 %vm145_vm0, %v385_v48  ;;  %v131_v48 = vmul.f32 %v98_v47, %v1052_v30 }
 0x11f   :  { %659 = vrot.lane.b32.xlu1 %v131_v48, %s846_s4 }
 0x120   :  { %v342_v32 = vpop.f32.mrf.mxu1 }
 0x121   :  { %v343_v49 = vadd.f32 %v1151_v42, %v342_v32  ;;  %v94_v32 = vpop.permute.xlu1 %93 }
 0x122   :  { %v129_v31 = vmul.f32 %v94_v32, %v1032_v26  ;;  %v92_v26 = vpop.permute.xlu2 %91 }
 0x123   :  { %v386_v50 = vmax.f32 %v343_v49, 0.0 }
 0x124   :  { %655 = vrot.lane.b32.xlu2 %v129_v31, %s846_s4 }
 0x125   :  { %784 = vmatmul.msk.f32.gmra.mxu2 %vm145_vm0, %v386_v50 }
 0x127   :  { %73 = vrot.lane.b32.xlu1 %v944_v10, %s845_s0 }
 0x128   :  { %v345_v51 = vpop.f32.mrf.mxu1 }
 0x129   :  { %v346_v52 = vadd.f32 %v1151_v42, %v345_v51 }
 0x12b   :  { %v387_v53 = vmax.f32 %v346_v52, 0.0 }
 0x12c   :  { %69 = vrot.lane.b32.xlu2 %v930_v8, %s845_s0 }
 0x12d   :  { %785 = vmatmul.msk.f32.gmra.mxu2 %vm145_vm0, %v387_v53  ;;  %v128_v53 = vmul.f32 %v92_v26, %v1016_v22 }
 0x12f   :  { %653 = vrot.lane.b32.xlu1 %v128_v53, %s846_s4 }
 0x130   :  { %v348_v54 = vpop.f32.mrf.mxu1 }
 0x131   :  { %v349_v55 = vadd.f32 %v1151_v42, %v348_v54 }
 0x133   :  { %v388_v56 = vmax.f32 %v349_v55, 0.0  ;;  %v90_v55 = vpop.permute.xlu2 %89 }
 0x135   :  { %786 = vmatmul.msk.f32.gmra.mxu2 %vm145_vm0, %v388_v56  ;;  %v127_v56 = vmul.f32 %v90_v55, %v1000_v18 }
 0x137   :  { %651 = vrot.lane.b32.xlu0 %v127_v56, %s846_s4 }
 0x138   :  { %v351_v57 = vpop.f32.mrf.mxu1 }
 0x139   :  { %v352_v58 = vadd.f32 %v1151_v42, %v351_v57 }
 0x13b   :  { %v389_v59 = vmax.f32 %v352_v58, 0.0  ;;  %v88_v58 = vpop.permute.xlu0 %87 }
 0x13d   :  { %787 = vmatmul.msk.f32.gmra.mxu2 %vm145_vm0, %v389_v59  ;;  %v84_v59 = vpop.permute.xlu2 %83 }
 0x140   :  { %v354_v60 = vpop.f32.mrf.mxu1 }
 0x141   :  { %v355_v61 = vadd.f32 %v1151_v42, %v354_v60  ;;  %v126_v60 = vmul.f32 %v88_v58, %v993_v17 }
 0x143   :  { %v390_v62 = vmax.f32 %v355_v61, 0.0  ;;  %v124_v61 = vmul.f32 %v84_v59, %v979_v15  ;;  %649 = vrot.lane.b32.xlu1 %v126_v60, %s846_s4 }
 0x145   :  { %788 = vmatmul.msk.f32.gmra.mxu2 %vm145_vm0, %v390_v62  ;;  %645 = vrot.lane.b32.xlu0 %v124_v61, %s846_s4  ;;  %v82_v62 = vpop.permute.xlu0 %81 }
 0x148   :  { %v357_v63 = vpop.f32.mrf.mxu1 }
 0x149   :  { %v358_v0 = vadd.f32 %v1151_v42, %v357_v63  ;;  %v123_v63 = vmul.f32 %v82_v62, %v972_v14 }
 0x14b   :  { %v391_v1 = vmax.f32 %v358_v0, 0.0  ;;  %643 = vrot.lane.b32.xlu1 %v123_v63, %s846_s4 }
 0x14d   :  { %789 = vmatmul.msk.f32.gmra.mxu2 %vm145_vm0, %v391_v1  ;;  %v78_v1 = vpop.permute.xlu0 %77 }
 0x150   :  { %v360_v2 = vpop.f32.mrf.mxu1 }
 0x151   :  { %v361_v3 = vadd.f32 %v1151_v42, %v360_v2  ;;  %v121_v2 = vmul.f32 %v78_v1, %v958_v12 }
 0x153   :  { %v392_v4 = vmax.f32 %v361_v3, 0.0  ;;  %639 = vrot.lane.b32.xlu0 %v121_v2, %s846_s4 }
 0x155   :  { %790 = vmatmul.msk.f32.gmra.mxu2 %vm145_vm0, %v392_v4  ;;  %v1233_v4 = vpop.permute.xlu0 %657 }
 0x158   :  { %v363_v5 = vpop.f32.mrf.mxu1 }
 0x159   :  { %v364_v6 = vadd.f32 %v1151_v42, %v363_v5  ;;  %v86_v5 = vpop.permute.xlu1 %85 }
 0x15a   :  { %v125_v14 = vmul.f32 %v86_v5, %v986_v16 }
 0x15b   :  { %v393_v7 = vmax.f32 %v364_v6, 0.0 }
 0x15c   :  { %647 = vrot.lane.b32.xlu2 %v125_v14, %s846_s4 }
 0x15d   :  { %791 = vmatmul.msk.f32.gmra.mxu2 %vm145_vm0, %v393_v7 }
 0x160   :  { %v366_v19 = vpop.f32.mrf.mxu1 }
 0x161   :  { %v367_v20 = vadd.f32 %v1151_v42, %v366_v19  ;;  %v72_v19 = vpop.permute.xlu0 %71 }
 0x162   :  { %v118_v12 = vmul.f32 %v72_v19, %v937_v9  ;;  %v840_v9 = vld [vmem:[%s1313_s6] ss:$0 sm:$0xff] }
 0x163   :  { %v394_v21 = vmax.f32 %v367_v20, 0.0  ;;  %v80_v20 = vpop.permute.xlu1 %79 }
 0x164   :  { %633 = vrot.lane.b32.xlu0 %v118_v12, %s846_s4 }
 0x165   :  { %792 = vmatmul.msk.f32.gmra.mxu2 %vm145_vm0, %v394_v21 }
 0x168   :  { %v369_v23 = vpop.f32.mrf.mxu1 }
 0x169   :  { %v370_v24 = vadd.f32 %v1151_v42, %v369_v23 }
 0x16b   :  { %v395_v25 = vmax.f32 %v370_v24, 0.0 }
 0x16d   :  { %793 = vmatmul.msk.f32.gmra.mxu2 %vm145_vm0, %v395_v25  ;;  %v1227_v0 = vpop.permute.xlu2 %661 }
 0x170   :  { %v372_v33 = vpop.f32.mrf.mxu1 }
 0x171   :  { %v373_v34 = vadd.f32 %v1151_v42, %v372_v33 }
 0x173   :  { %v396_v35 = vmax.f32 %v373_v34, 0.0 }
 0x175   :  { %794 = vmatmul.msk.f32.gmra.mxu2 %vm145_vm0, %v396_v35  ;;  %v76_v15 = vpop.permute.xlu2 %75 }
 0x176   :  { %v120_v3 = vmul.f32 %v76_v15, %v951_v11  ;;  %v122_v11 = vmul.f32 %v80_v20, %v965_v13 }
 0x178   :  { %v375_v36 = vpop.f32.mrf.mxu1  ;;  %637 = vrot.lane.b32.xlu1 %v120_v3, %s846_s4  ;;  %641 = vrot.lane.b32.xlu2 %v122_v11, %s846_s4 }
 0x179   :  { %v376_v37 = vadd.f32 %v1151_v42, %v375_v36 }
 0x17b   :  { %v397_v38 = vmax.f32 %v376_v37, 0.0 }
 0x17d   :  { %795 = vmatmul.msk.f32.gmra.mxu2 %vm145_vm0, %v397_v38 }
 0x17e   :  { %v1237_v7 = vpop.permute.xlu2 %655 }
 0x180   :  { %v378_v39 = vpop.f32.mrf.mxu1 }
 0x181   :  { %v379_v29 = vadd.f32 %v1151_v42, %v378_v39 }
 0x183   :  { %v398_v40 = vmax.f32 %v379_v29, 0.0 }
 0x185   :  { %796 = vmatmul.msk.f32.gmra.mxu2 %vm145_vm0, %v398_v40 }
 0x186   :  { %v70_v23 = vpop.permute.xlu2 %69 }
 0x187   :  { %v117_v24 = vmul.f32 %v70_v23, %v930_v8 }
 0x188   :  { %v381_v44 = vpop.f32.mrf.mxu1 }
 0x189   :  { %v382_v45 = vadd.f32 %v1151_v42, %v381_v44  ;;  %631 = vrot.lane.b32.xlu1 %v117_v24, %s846_s4 }
 0x18b   :  { %v399_v46 = vmax.f32 %v382_v45, 0.0 }
 0x18d   :  { %797 = vmatmul.msk.f32.gmra.mxu2 %vm145_vm0, %v399_v46 }
 0x191   :  { %v660_v25 = vpop.permute.xlu1 %659 }
 0x198   :  { %v1199_v42 = vpop.f32.mrf.mxu2 }
 0x199   :  { %v74_v28 = vpop.permute.xlu1 %73 }
 0x19a   :  { %v119_v33 = vmul.f32 %v74_v28, %v944_v10 }
 0x19c   :  { %635 = vrot.lane.b32.xlu2 %v119_v33, %s846_s4 }
 0x1a0   :  { %v1203_v30 = vpop.f32.mrf.mxu2 }
 0x1a8   :  { %v1205_v49 = vpop.f32.mrf.mxu2 }
 0x1b0   :  { %v1207_v50 = vpop.f32.mrf.mxu2 }
 0x1b6   :  { %v648_v62 = vpop.permute.xlu2 %647 }
 0x1b8   :  { %v1209_v51 = vpop.f32.mrf.mxu2 }
 0x1b9   :  { %v490_v55 = vadd.f32 %v840_v9, %v1209_v51  ;;  %v478_v51 = vadd.f32 %v840_v9, %v1199_v42  ;;  %v652_v42 = vpop.permute.xlu0 %651 }
 0x1bb   :  { %v529_v58 = vmax.f32 %v490_v55, 0.0 }
 0x1c0   :  { %v1211_v52 = vpop.f32.mrf.mxu2 }
 0x1c1   :  { %v493_v26 = vadd.f32 %v840_v9, %v1211_v52  ;;  %v481_v52 = vadd.f32 %v840_v9, %v1203_v30  ;;  %v654_v30 = vpop.permute.xlu1 %653  ;;  %v646_v63 = vpop.permute.xlu0 %645 }
 0x1c3   :  { %v530_v56 = vmax.f32 %v493_v26, 0.0  ;;  %v526_v61 = vmax.f32 %v481_v52, 0.0 }
 0x1c8   :  { %v1215_v54 = vpop.f32.mrf.mxu2 }
 0x1c9   :  { %v496_v32 = vadd.f32 %v840_v9, %v1215_v54  ;;  %v484_v54 = vadd.f32 %v840_v9, %v1205_v49  ;;  %v542_v49 = vld [vmem:[%s1314_s8] sm:$0xff]  ;;  %v640_v15 = vpop.permute.xlu0 %639 }
 0x1cb   :  { %v531_v53 = vmax.f32 %v496_v32, 0.0  ;;  %v527_v60 = vmax.f32 %v484_v54, 0.0 }
 0x1d0   :  { %v1219_v57 = vpop.f32.mrf.mxu2 }
 0x1d1   :  { %v499_v47 = vadd.f32 %v840_v9, %v1219_v57  ;;  %v487_v57 = vadd.f32 %v840_v9, %v1207_v50  ;;  %v650_v50 = vpop.permute.xlu1 %649 }
 0x1d2   :  { %v642_v2 = vpop.permute.xlu2 %641 }
 0x1d3   :  { %v532_v31 = vmax.f32 %v499_v47, 0.0  ;;  %v528_v59 = vmax.f32 %v487_v57, 0.0 }
 0x1d6   :  { %v634_v5 = vpop.permute.xlu0 %633 }
 0x1d8   :  { %v501_v22 = vpop.f32.mrf.mxu2 }
 0x1d9   :  { %v502_v45 = vadd.f32 %v840_v9, %v501_v22  ;;  %v525_v22 = vmax.f32 %v478_v51, 0.0  ;;  %v644_v1 = vpop.permute.xlu1 %643 }
 0x1db   :  { %v533_v48 = vmax.f32 %v502_v45, 0.0 }
 0x1e0   :  { %v504_v18 = vpop.f32.mrf.mxu2 }
 0x1e1   :  { %v505_v43 = vadd.f32 %v840_v9, %v504_v18  ;;  %v15_v18 = vstv %s1315_s9 }
 0x1e2   :  { %16 = vst [vmem:[#allocation2] sm:$0x1] %v15_v18 }
 0x1e3   :  { %v534_v46 = vmax.f32 %v505_v43, 0.0 }
 0x1e8   :  { %v507_v17 = vpop.f32.mrf.mxu2 }
 0x1e9   :  { %v508_v40 = vadd.f32 %v840_v9, %v507_v17  ;;  %v718_v17 = vld [vmem:[#allocation2] sm:$0x1] }
 0x1ea   :  { %v638_v3 = vpop.permute.xlu1 %637 }
 0x1eb   :  { %v535_v44 = vmax.f32 %v508_v40, 0.0 }
 0x1f0   :  { %v510_v6 = vpop.f32.mrf.mxu2 }
 0x1f1   :  { %v511_v10 = vadd.f32 %v840_v9, %v510_v6  ;;  %v541_v6 = vld [vmem:[%s1316_s7] sm:$0xff] }
 0x1f3   :  { %v536_v41 = vmax.f32 %v511_v10, 0.0 }
 0x1f8   :  { %v513_v21 = vpop.f32.mrf.mxu2 }
 0x1f9   :  { %v514_v38 = vadd.f32 %v840_v9, %v513_v21 }
 0x1fb   :  { %v537_v29 = vmax.f32 %v514_v38, 0.0  ;;  %v632_v14 = vpop.permute.xlu1 %631 }
 0x200   :  { %v516_v16 = vpop.f32.mrf.mxu2 }
 0x201   :  { %v517_v8 = vadd.f32 %v840_v9, %v516_v16 }
 0x203   :  { %v538_v39 = vmax.f32 %v517_v8, 0.0 }
 0x208   :  { %v519_v27 = vpop.f32.mrf.mxu2 }
 0x209   :  { %v520_v35 = vadd.f32 %v840_v9, %v519_v27 }
 0x20b   :  { %v539_v37 = vmax.f32 %v520_v35, 0.0 }
 0x210   :  { %v522_v13 = vpop.f32.mrf.mxu2 }
 0x211   :  { %v523_v34 = vadd.f32 %v840_v9, %v522_v13 }
 0x213   :  { %v540_v36 = vmax.f32 %v523_v34, 0.0 }
 0x215   :  { %798 = vmatpush.xpose.msk.msra.mxu3 %vm543_vm1, %v540_v36 }
 0x219   :  { %799 = vmatpush.xpose.msk.msra.mxu3 %vm543_vm1, %v539_v37 }
 0x21d   :  { %800 = vmatpush.xpose.msk.msra.mxu3 %vm543_vm1, %v538_v39 }
 0x221   :  { %801 = vmatpush.xpose.msk.msra.mxu3 %vm543_vm1, %v537_v29 }
 0x225   :  { %802 = vmatpush.xpose.msk.msra.mxu3 %vm543_vm1, %v536_v41 }
 0x229   :  { %803 = vmatpush.xpose.msk.msra.mxu3 %vm543_vm1, %v535_v44 }
 0x22d   :  { %804 = vmatpush.xpose.msk.msra.mxu3 %vm543_vm1, %v534_v46 }
 0x231   :  { %805 = vmatpush.xpose.msk.msra.mxu3 %vm543_vm1, %v533_v48 }
 0x235   :  { %806 = vmatpush.xpose.msk.msra.mxu3 %vm543_vm1, %v532_v31 }
 0x239   :  { %807 = vmatpush.xpose.msk.msra.mxu3 %vm543_vm1, %v531_v53 }
 0x23d   :  { %808 = vmatpush.xpose.msk.msra.mxu3 %vm543_vm1, %v530_v56 }
 0x241   :  { %809 = vmatpush.xpose.msk.msra.mxu3 %vm543_vm1, %v529_v58 }
 0x245   :  { %810 = vmatpush.xpose.msk.msra.mxu3 %vm543_vm1, %v528_v59 }
 0x249   :  { %811 = vmatpush.xpose.msk.msra.mxu3 %vm543_vm1, %v527_v60 }
 0x24d   :  { %812 = vmatpush.xpose.msk.msra.mxu3 %vm543_vm1, %v526_v61 }
 0x251   :  { %813 = vmatpush.xpose.msk.msra.mxu3 %vm543_vm1, %v525_v22 }
 0x254   :  { %814 = vmatmul.msk.f32.vlgmr.msra.gmra.mxu3 %vm543_vm1, %v542_v49 }
 0x255   :  { %815 = vmatpush.xpose.msk.msrb.mxu3 %vm543_vm1, %v1227_v0  ;;  %v847_v0 = vmov 0  }
 0x256   :  { %836 = vset.pattern.permute.xlu2 %v847_v0  ;;  %837 = vset.pattern.permute.xlu0 %v847_v0 }
 0x257   :  { %721 = vperm.xlu2 %836, %v718_v17  }
 0x259   :  { %816 = vmatpush.xpose.msk.msrb.mxu3 %vm543_vm1, %v660_v25 }
 0x25d   :  { %817 = vmatpush.xpose.msk.msrb.mxu3 %vm543_vm1, %v1233_v4  ;;  %v636_v4 = vpop.permute.xlu2 %635 }
 0x261   :  { %818 = vmatpush.xpose.msk.msrb.mxu3 %vm543_vm1, %v1237_v7 }
 0x265   :  { %819 = vmatpush.xpose.msk.msrb.mxu3 %vm543_vm1, %v654_v30 }
 0x269   :  { %820 = vmatpush.xpose.msk.msrb.mxu3 %vm543_vm1, %v652_v42 }
 0x26d   :  { %821 = vmatpush.xpose.msk.msrb.mxu3 %vm543_vm1, %v650_v50 }
 0x271   :  { %822 = vmatpush.xpose.msk.msrb.mxu3 %vm543_vm1, %v648_v62 }
 0x275   :  { %823 = vmatpush.xpose.msk.msrb.mxu3 %vm543_vm1, %v646_v63 }
 0x279   :  { %824 = vmatpush.xpose.msk.msrb.mxu3 %vm543_vm1, %v644_v1 }
 0x27d   :  { %825 = vmatpush.xpose.msk.msrb.mxu3 %vm543_vm1, %v642_v2 }
 0x281   :  { %826 = vmatpush.xpose.msk.msrb.mxu3 %vm543_vm1, %v640_v15 }
 0x285   :  { %827 = vmatpush.xpose.msk.msrb.mxu3 %vm543_vm1, %v638_v3 }
 0x289   :  { %828 = vmatpush.xpose.msk.msrb.mxu3 %vm543_vm1, %v636_v4 }
 0x28d   :  { %829 = vmatpush.xpose.msk.msrb.mxu3 %vm543_vm1, %v634_v5 }
 0x291   :  { %830 = vmatpush.xpose.msk.msrb.mxu3 %vm543_vm1, %v632_v14 }
 0x294   :  { %831 = vmatmul.msk.f32.vlgmr.msrb.gmra.mxu3 %vm543_vm1, %v541_v6 }
 0x2b1   :  { %v722_v19 = vpop.permute.xlu2 %721 }
 0x2b2   :  { %v724_v12 = vperm.slane %v722_v19, 0 }
 0x2d7   :  { %v612_v7 = vpop.f32.mrf.mxu3 }
 0x317   :  { %v715_v20 = vpop.f32.mrf.mxu3 }
 0x318   :  { %v716_v11 = vadd.f32 %v715_v20, %v612_v7 }
 0x31a   :  { %v725_v21 = vadd.f32 %v724_v12, %v716_v11 }
 0x31c   :  { %v832_v23 = vmul.f32 -1.442695, %v725_v21 }
 0x31e   :  { %841 = vpow2.f32 %v832_v23 }
 0x324   :  { %v842_v24 = vpop.eup %841 }
 0x325   :  { %v729_v16 = vadd.f32 1.0, %v842_v24 }
 0x327   :  { %843 = vrcp.f32 %v729_v16  ;;  %v741_v33 = vand.u32 2147483648, %v729_v16  ;;  %v739_v13 = vand.u32 2147483647, %v729_v16  ;;  %vm735_vm3 = vweird.f32 %v729_v16 }
 0x329   :  { %v742_v35 = vor.u32 1.1754944e-38, %v741_v33  ;;  %vm740_vm5 = vcmp.eq.f32.partialorder %v739_v13, 8.507059e+37 }
 0x32d   :  { %v844_v25 = vpop.eup %843 }
 0x32e   :  { %v731_v27 = vmul.f32 %v844_v25, %v729_v16  ;;  %vm736_vm2 = vweird.f32 %v844_v25 }
 0x32f   :  { %vm737_vm4 = vmor %vm735_vm3, %vm736_vm2 }
 0x330   :  { %v732_v28 = vsub.f32 1.0, %v731_v27 }
 0x332   :  { %v733_v9 = vmul.f32 %v844_v25, %v732_v28 }
 0x334   :  { %v734_v34 = vadd.f32 %v844_v25, %v733_v9 }
 0x336   :  { %v738_v36 = vsel %vm737_vm4, %v844_v25, %v734_v34 }
 0x337   :  { %v743_v8 = vsel %vm740_vm5, %v742_v35, %v738_v36 }
 0x338   :  { %745 = vst [vmem:[%s1317_s10] sm:$0x1] %v743_v8 }

</bundles_post_ra>
